<compile_context>
chip_gen: v5e
topology: v5e:2x2
jax: 0.10.0
libtpu: 0.0.40
codegen_flags: <defaults>
</compile_context>

<pallas_src>
import jax
import jax.numpy as jnp
from jax.experimental import pallas as pl
from jax.experimental.pallas import tpu as pltpu


def _round_up(x, m):
    return ((x + m - 1) // m) * m


# ----------------------------------------------------------------------------
# Pallas kernels
# ----------------------------------------------------------------------------
def _deconv_stats_kernel(g_ref, w_ref, o_ref, sum_ref, sq_ref):
    """One MXU matmul per point-tile, with fused per-tile BN partial stats.

    g_ref : [tile_n, Kc_pad]   gathered neighbourhood rows
    w_ref : [Kc_pad, outc_pad] folded (and zero-padded) weights
    o_ref : [tile_n, outc_pad] conv output (lane-dense)
    sum_ref / sq_ref : [1, 1, outc_pad] per-tile channel sum / sum of squares
    """
    acc = jnp.dot(g_ref[...], w_ref[...], preferred_element_type=jnp.float32)
    o_ref[...] = acc.astype(o_ref.dtype)
    sum_ref[...] = jnp.sum(acc, axis=0)[None, None, :]
    sq_ref[...] = jnp.sum(acc * acc, axis=0)[None, None, :]


def _bn_relu_kernel(y_ref, scale_ref, shift_ref, o_ref):
    """y * scale + shift, then ReLU (scale/shift fold mean/var/gamma/beta)."""
    y = y_ref[...].astype(jnp.float32)
    o_ref[...] = jnp.maximum(y * scale_ref[...] + shift_ref[...], 0.0).astype(
        o_ref.dtype)


# ----------------------------------------------------------------------------
# Pallas wrappers
# ----------------------------------------------------------------------------
def deconv_with_stats(gathered, w2, *, tile_n=512):
    """gathered: [N_pad, Kc_pad], w2: [Kc_pad, outc_pad]
    -> conv [N_pad, outc_pad], partial sums / sumsq [nt, 1, outc_pad]."""
    n_pad, kc_pad = gathered.shape
    outc_pad = w2.shape[1]
    nt = n_pad // tile_n
    return pl.pallas_call(
        _deconv_stats_kernel,
        out_shape=(
            jax.ShapeDtypeStruct((n_pad, outc_pad), jnp.float32),
            jax.ShapeDtypeStruct((nt, 1, outc_pad), jnp.float32),
            jax.ShapeDtypeStruct((nt, 1, outc_pad), jnp.float32),
        ),
        grid=(nt,),
        in_specs=[
            pl.BlockSpec((tile_n, kc_pad), lambda i: (i, 0)),
            # Constant index_map: weights fetched once, resident in VMEM.
            pl.BlockSpec((kc_pad, outc_pad), lambda i: (0, 0)),
        ],
        out_specs=(
            pl.BlockSpec((tile_n, outc_pad), lambda i: (i, 0)),
            pl.BlockSpec((1, 1, outc_pad), lambda i: (i, 0, 0)),
            pl.BlockSpec((1, 1, outc_pad), lambda i: (i, 0, 0)),
        ),
        compiler_params=pltpu.CompilerParams(
            dimension_semantics=("parallel",)),
    )(gathered, w2)


def bn_relu(y, scale, shift, *, tile_n=512):
    """y: [N_pad, outc_pad], scale/shift: [1, outc_pad] -> [N_pad, outc_pad]."""
    n_pad, outc_pad = y.shape
    nt = n_pad // tile_n
    return pl.pallas_call(
        _bn_relu_kernel,
        out_shape=jax.ShapeDtypeStruct((n_pad, outc_pad), jnp.float32),
        grid=(nt,),
        in_specs=[
            pl.BlockSpec((tile_n, outc_pad), lambda i: (i, 0)),
            pl.BlockSpec((1, outc_pad), lambda i: (0, 0)),
            pl.BlockSpec((1, outc_pad), lambda i: (0, 0)),
        ],
        out_specs=pl.BlockSpec((tile_n, outc_pad), lambda i: (i, 0)),
        compiler_params=pltpu.CompilerParams(
            dimension_semantics=("parallel",)),
    )(y, scale, shift)


# ----------------------------------------------------------------------------
# Glue: neighbour-index construction (sorted keys + searchsorted, O(K N logN))
# ----------------------------------------------------------------------------
def _kernel_offsets(ks):
    r = ks // 2
    ar = jnp.arange(-r, r + 1, dtype=jnp.int32)
    return jnp.stack(jnp.meshgrid(ar, ar, ar, indexing="ij"),
                     axis=-1).reshape(-1, 3)  # [K, 3]


def build_gather_indices(coords, ks, grid_size):
    """idx[n, k] = row of feats providing the neighbour of point n at kernel
    offset k (sentinel value N when no active neighbour exists)."""
    n = coords.shape[0]
    r = ks // 2
    offs = _kernel_offsets(ks)
    # NOTE: int32 keys; for very large grids / batches enable x64 or use a
    # collision-checked hash.
    G = grid_size + 2 * (r + 1)

    def key_of(c4):  # (b, x, y, z), spatial shifted to be strictly positive
        b = c4[..., 0]
        x = c4[..., 1] + (r + 1)
        y = c4[..., 2] + (r + 1)
        z = c4[..., 3] + (r + 1)
        return ((b * G + x) * G + y) * G + z

    in_keys = key_of(coords)                       # [N]
    order = jnp.argsort(in_keys)
    sorted_keys = in_keys[order]

    def per_offset(off):
        # transposed conv: out[p] sums contributions from in[p - off] @ W[off]
        q_keys = key_of(coords.at[:, 1:].add(-off))
        pos = jnp.clip(jnp.searchsorted(sorted_keys, q_keys), 0, n - 1)
        found = sorted_keys[pos] == q_keys
        return jnp.where(found, order[pos], n)     # N == sentinel (zero row)

    idx = jax.vmap(per_offset)(offs)               # [K, N]
    return idx.T                                   # [N, K]


# ----------------------------------------------------------------------------
# Full block
# ----------------------------------------------------------------------------
def basic_deconvolution_block(feats, coords, weights, gamma, beta, *,
                              ks=3, grid_size=16, eps=1e-5, tile_n=512):
    n, inc = feats.shape
    K, _, outc = weights.shape
    kc = K * inc

    # --- gather neighbourhood rows (XLA glue; see TODO about in-kernel gather)
    idx = build_gather_indices(coords, ks, grid_size)            # [N, K]
    feats_ext = jnp.concatenate(
        [feats, jnp.zeros((1, inc), feats.dtype)], axis=0)       # zero row = N
    gathered = feats_ext[idx].reshape(n, kc)                     # [N, K*inc]

    # --- pad to lane/tile-friendly shapes
    kc_pad = _round_up(kc, 128)
    outc_pad = _round_up(outc, 128)
    n_pad = _round_up(n, tile_n)
    gathered = jnp.pad(gathered, ((0, n_pad - n), (0, kc_pad - kc)))
    w2 = jnp.pad(weights.reshape(kc, outc).astype(jnp.float32),
                 ((0, kc_pad - kc), (0, outc_pad - outc)))

    # --- sparse transposed conv + fused BN partial stats (Pallas)
    conv, psum, psq = deconv_with_stats(gathered, w2, tile_n=tile_n)
    s = jnp.sum(psum, axis=(0, 1))                               # [outc_pad]
    sq = jnp.sum(psq, axis=(0, 1))

    # --- BatchNorm (training-mode batch statistics over the N valid points;
    #     padded rows are exactly zero so they contribute nothing to the sums,
    #     and they are divided out by using n, not n_pad).
    mean = s / n
    var = sq / n - mean * mean          # biased variance, as PyTorch BN fwd
    gamma_p = jnp.pad(gamma.astype(jnp.float32), (0, outc_pad - outc))
    beta_p = jnp.pad(beta.astype(jnp.float32), (0, outc_pad - outc))
    inv_std = jax.lax.rsqrt(var + eps)
    scale = (gamma_p * inv_std)[None, :]
    shift = (beta_p - mean * gamma_p * inv_std)[None, :]

    # --- normalize + ReLU (Pallas)
    out = bn_relu(conv, scale, shift, tile_n=tile_n)
    return out[:n, :outc]


# ----------------------------------------------------------------------------
# Pure-JAX reference (independent O(N^2) dense coordinate match)
# ----------------------------------------------------------------------------
def _reference_block(feats, coords, weights, gamma, beta, *, ks, grid_size,
                     eps=1e-5):
    r = ks // 2
    offs = _kernel_offsets(ks)
    G = grid_size + 2 * (r + 1)

    def key_of(c4):
        return (((c4[..., 0] * G + c4[..., 1] + (r + 1)) * G
                 + c4[..., 2] + (r + 1)) * G + c4[..., 3] + (r + 1))

    in_keys = key_of(coords)

    def per_offset(off):
        q_keys = key_of(coords.at[:, 1:].add(-off))
        match = q_keys[:, None] == in_keys[None, :]
        found = jnp.any(match, axis=1)
        g = feats[jnp.argmax(match, axis=1)]
        return jnp.where(found[:, None], g, 0.0)

    gathered = jax.vmap(per_offset)(offs)                        # [K, N, inc]
    conv = jnp.einsum("knc,kcd->nd", gathered, weights)
    m = conv.mean(axis=0)
    v = conv.var(axis=0)
    return jnp.maximum(
        gamma * (conv - m) * jax.lax.rsqrt(v + eps) + beta, 0.0)


# ----------------------------------------------------------------------------
if __name__ == "__main__":
    key = jax.random.PRNGKey(0)
    k0, k1, k2, k3 = jax.random.split(key, 4)

    # Small synthetic sparse tensor: batch=2, 16^3 grid, inc=8 -> outc=16.
    inc, outc, ks, grid_size = 8, 16, 3, 16
    batch = 2
    n_points = 200

    # Unique random voxel coordinates (b, x, y, z).
    total_cells = batch * grid_size ** 3
    cell = jax.random.choice(k0, total_cells, shape=(n_points,), replace=False)
    b = cell // grid_size ** 3
    rem = cell % grid_size ** 3
    x = rem // (grid_size ** 2)
    y = (rem // grid_size) % grid_size
    z = rem % grid_size
    coords = jnp.stack([b, x, y, z], axis=1).astype(jnp.int32)

    feats = jax.random.normal(k1, (n_points, inc), dtype=jnp.float32)

    K = ks ** 3
    weights = (jax.random.normal(k2, (K, inc, outc), dtype=jnp.float32)
               * (2.0 / (K * inc)) ** 0.5)
    gamma = 1.0 + 0.1 * jax.random.normal(k3, (outc,), dtype=jnp.float32)
    beta = 0.05 * jnp.arange(outc, dtype=jnp.float32)

    out = basic_deconvolution_block(
        feats, coords, weights, gamma, beta, ks=ks, grid_size=grid_size)
    out = jax.block_until_ready(out)

    ref = _reference_block(
        feats, coords, weights, gamma, beta, ks=ks, grid_size=grid_size)

    assert out.shape == (n_points, outc)
    max_err = float(jnp.max(jnp.abs(out - ref)))
    assert jnp.allclose(out, ref, atol=1e-3, rtol=1e-3), max_err

    print("KERNEL_OK")
</pallas_src>

<mosaic_0001>
module attributes {stable_mosaic.version = 11 : i64} {
  func.func @_deconv_stats_kernel(%arg0: i32, %arg1: memref<512x256xf32, #tpu.memory_space<vmem>>, %arg2: memref<256x128xf32, #tpu.memory_space<vmem>>, %arg3: memref<512x128xf32, #tpu.memory_space<vmem>>, %arg4: memref<1x1x128xf32, #tpu.memory_space<vmem>>, %arg5: memref<1x1x128xf32, #tpu.memory_space<vmem>>) attributes {dimension_semantics = [#tpu.dimension_semantics<parallel>], iteration_bounds = array<i64: 1>, scalar_prefetch = 0 : i64, scratch_operands = 0 : i64, tpu.core_type = #tpu.core_type<tc>, window_params = [{transform_indices = @transform_0, window_bounds = array<i64: 512, 256>}, {pipeline_mode = #tpu.pipeline_mode<synchronous>, transform_indices = @transform_1, window_bounds = array<i64: 256, 128>}, {transform_indices = @transform_2, window_bounds = array<i64: 512, 128>}, {transform_indices = @transform_3, window_bounds = array<i64: 1, 1, 128>}, {transform_indices = @transform_4, window_bounds = array<i64: 1, 1, 128>}]} {
    %c0 = arith.constant 0 : index
    %c0_0 = arith.constant 0 : index
    %0 = vector.load %arg1[%c0, %c0_0] : memref<512x256xf32, #tpu.memory_space<vmem>>, vector<512x256xf32>
    %c0_1 = arith.constant 0 : index
    %c0_2 = arith.constant 0 : index
    %1 = vector.load %arg2[%c0_1, %c0_2] : memref<256x128xf32, #tpu.memory_space<vmem>>, vector<256x128xf32>
    %cst = arith.constant dense<0.000000e+00> : vector<512x128xf32>
    %2 = tpu.matmul %0, %1, %cst {dimension_numbers = #tpu.dot_dimension_numbers<[1], [0], [0], [1], [0, 0, 1, 1], [], []>} : vector<512x256xf32>, vector<256x128xf32>, vector<512x128xf32> -> vector<512x128xf32>
    %c0_3 = arith.constant 0 : index
    %c0_4 = arith.constant 0 : index
    %3 = vector.load %arg3[%c0_3, %c0_4] : memref<512x128xf32, #tpu.memory_space<vmem>>, vector<512x128xf32>
    tpu.vector_store %arg3[%c0_3, %c0_4], %2 {strides = array<i32>} : memref<512x128xf32, #tpu.memory_space<vmem>>, vector<512x128xf32>,
    %cst_5 = arith.constant dense<0.000000e+00> : vector<128xf32>
    %4 = vector.multi_reduction <add>, %2, %cst_5 [0] : vector<512x128xf32> to vector<128xf32>
    %5 = vector.shape_cast %4 : vector<128xf32> to vector<1x1x128xf32>
    %c0_6 = arith.constant 0 : index
    %c0_7 = arith.constant 0 : index
    %c0_8 = arith.constant 0 : index
    %6 = vector.load %arg4[%c0_6, %c0_7, %c0_8] : memref<1x1x128xf32, #tpu.memory_space<vmem>>, vector<1x1x128xf32>
    tpu.vector_store %arg4[%c0_6, %c0_7, %c0_8], %5 {strides = array<i32>} : memref<1x1x128xf32, #tpu.memory_space<vmem>>, vector<1x1x128xf32>,
    %7 = arith.mulf %2, %2 : vector<512x128xf32>
    %cst_9 = arith.constant dense<0.000000e+00> : vector<128xf32>
    %8 = vector.multi_reduction <add>, %7, %cst_9 [0] : vector<512x128xf32> to vector<128xf32>
    %9 = vector.shape_cast %8 : vector<128xf32> to vector<1x1x128xf32>
    %c0_10 = arith.constant 0 : index
    %c0_11 = arith.constant 0 : index
    %c0_12 = arith.constant 0 : index
    %10 = vector.load %arg5[%c0_10, %c0_11, %c0_12] : memref<1x1x128xf32, #tpu.memory_space<vmem>>, vector<1x1x128xf32>
    tpu.vector_store %arg5[%c0_10, %c0_11, %c0_12], %9 {strides = array<i32>} : memref<1x1x128xf32, #tpu.memory_space<vmem>>, vector<1x1x128xf32>,
    return
  }
  func.func @transform_0(%arg0: i32) -> (i32, i32) {
    %c0_i32 = arith.constant 0 : i32
    %c0_i32_0 = arith.constant 0 : i32
    return %arg0, %c0_i32 : i32, i32
  }
  func.func @transform_1(%arg0: i32) -> (i32, i32) {
    %c0_i32 = arith.constant 0 : i32
    %c0_i32_0 = arith.constant 0 : i32
    %c0_i32_1 = arith.constant 0 : i32
    return %c0_i32, %c0_i32_0 : i32, i32
  }
  func.func @transform_2(%arg0: i32) -> (i32, i32) {
    %c0_i32 = arith.constant 0 : i32
    %c0_i32_0 = arith.constant 0 : i32
    return %arg0, %c0_i32 : i32, i32
  }
  func.func @transform_3(%arg0: i32) -> (i32, i32, i32) {
    %c0_i32 = arith.constant 0 : i32
    %c0_i32_0 = arith.constant 0 : i32
    %c0_i32_1 = arith.constant 0 : i32
    return %arg0, %c0_i32, %c0_i32_0 : i32, i32, i32
  }
  func.func @transform_4(%arg0: i32) -> (i32, i32, i32) {
    %c0_i32 = arith.constant 0 : i32
    %c0_i32_0 = arith.constant 0 : i32
    %c0_i32_1 = arith.constant 0 : i32
    return %arg0, %c0_i32, %c0_i32_0 : i32, i32, i32
  }
}

</mosaic_0001>

<bundles_post_ra>
// kernel: tpu_custom_call.1
= control target key start
LH: loop header
LB: loop body
LE: loop exit
PB: predicated region body
PF: predicated region fallthrough
CT: control target
= control target key end

     0   :  { %10 = vsyncpa [#allocation3], 0  ;;  %s1367_s0 = inlined_call_operand.hbm [shape: f32[512,256], index: 0, kind: input, shape index: {}]   ;;  %s1368_s1 = inlined_call_operand.hbm [shape: f32[256,128], index: 1, kind: input, shape index: {}]   ;;  %s1369_s2 = inlined_call_operand.hbm [shape: f32[512,128], index: 2, kind: output, shape index: {0}]   ;;  %s1370_s3 = inlined_call_operand.hbm [shape: f32[1,1,128], index: 3, kind: output, shape index: {1}]   ;;  %s1371_s4 = inlined_call_operand.hbm [shape: f32[1,1,128], index: 4, kind: output, shape index: {2}]  }
   0x1   :  { %11 = vsyncpa [#allocation6], 0 }
   0x2   :  { %12 = vsyncpa [#allocation4], 0 }
   0x3   :  { %13 = vsyncpa [#allocation9], 0  ;;  %s18_s17 = sshll.u32 %s1367_s0, 4  ;;  %s1114_s18 = smov [#allocation2]   ;;  %s19_s17 = int_to_ptr.hbm [resolvable:$true] %s18_s17 }
   0x4   :  { %s20_s19 = sshll.u32 %s1114_s18, 4  ;;  %s31_s22 = sshll.u32 %s1368_s1, 4  ;;  %s21_s19 = int_to_ptr.vmem [resolvable:$true] %s20_s19  ;;  %s32_s22 = int_to_ptr.hbm [resolvable:$true] %s31_s22 }
   0x5   :  { %s1115_s23 = smov 256   ;;  %s1116_s24 = smov 16  }
   0x6   :  { %26 = dma.hbm_to_vmem [thread:$0]  %s19_s17, 16384, %s21_s19, [#allocation3], %s1115_s23, %s1115_s23, %s1116_s24  }
   0x7   :  { %s1117_s25 = smov [#allocation5]   ;;  %s1118_s27 = smov 128  }
   0x8   :  { %s33_s26 = sshll.u32 %s1117_s25, 4  ;;  %s1119_s28 = smov 8   ;;  %s34_s26 = int_to_ptr.vmem [resolvable:$true] %s33_s26 }
   0x9   :  { %39 = dma.hbm_to_vmem [thread:$0]  %s32_s22, 4096, %s34_s26, [#allocation6], %s1118_s27, %s1118_s27, %s1119_s28  }
   0xa   :  { %1106 = dma.done.wait [#allocation3], 16384  }
   0xb   :  { %1107 = vsyncadd [#allocation3], 4294950912 }
   0xc   :  { %1108 = dma.done.wait [#allocation6], 4096  }
   0xd   :  { %1109 = vsyncadd [#allocation6], 4294963200  ;;  %v191_v0 = vld [vmem:[#allocation5 + $0x78] sm:$0xff]  ;;  %v190_v2 = vld [vmem:[#allocation5 + $0x70] sm:$0xff]  ;;  %s1120_s0 = smov [#allocation7]   ;;  %s900_s5 = sshll.u32 %s1369_s2, 4  ;;  %s901_s5 = int_to_ptr.hbm [resolvable:$true] %s900_s5 }
   0xe   :  { %v207_v1 = vld [vmem:[#allocation5 + $0xf8] sm:$0xff]  ;;  %208 = vmatpush.msra.mxu0 %v191_v0  ;;  %v206_v3 = vld [vmem:[#allocation5 + $0xf0] sm:$0xff]  ;;  %v189_v4 = vld [vmem:[#allocation5 + $0x68] sm:$0xff]  ;;  %945 = vmatpush.msra.mxu2 %v191_v0  ;;  %s898_s1 = sshll.u32 %s1120_s0, 4  ;;  %s1121_s2 = smov [#allocation8]   ;;  %s899_s1 = int_to_ptr.vmem [resolvable:$true] %s898_s1 }
   0xf   :  { %417 = vmatpush.msra.mxu1 %v207_v1  ;;  %v205_v5 = vld [vmem:[#allocation5 + $0xe8] sm:$0xff]  ;;  %961 = vmatpush.msra.mxu3 %v207_v1  ;;  %v188_v6 = vld [vmem:[#allocation5 + $0x60] sm:$0xff]  ;;  %v187_v8 = vld [vmem:[#allocation5 + $0x58] sm:$0xff]  ;;  %s912_s6 = sshll.u32 %s1121_s2, 4  ;;  %s914_s9 = sshll.u32 %s1370_s3, 4  ;;  %s913_s6 = int_to_ptr.vmem [resolvable:$true] %s912_s6  ;;  %s915_s9 = int_to_ptr.hbm [resolvable:$true] %s914_s9 }
  0x10   :  { %209 = vmatpush.msra.mxu0 %v190_v2  ;;  %v204_v7 = vld [vmem:[#allocation5 + $0xe0] sm:$0xff]  ;;  %946 = vmatpush.msra.mxu2 %v190_v2  ;;  %v203_v9 = vld [vmem:[#allocation5 + $0xd8] sm:$0xff]  ;;  %v186_v10 = vld [vmem:[#allocation5 + $0x50] sm:$0xff]  ;;  %s1122_s10 = smov [#allocation10]   ;;  %s925_s14 = sshll.u32 %s1371_s4, 4  ;;  %s926_s14 = int_to_ptr.hbm [resolvable:$true] %s925_s14 }
  0x11   :  { %418 = vmatpush.msra.mxu1 %v206_v3  ;;  %962 = vmatpush.msra.mxu3 %v206_v3  ;;  %v202_v11 = vld [vmem:[#allocation5 + $0xd0] sm:$0xff]  ;;  %v185_v12 = vld [vmem:[#allocation5 + $0x48] sm:$0xff]  ;;  %v184_v14 = vld [vmem:[#allocation5 + $0x40] sm:$0xff]  ;;  %s923_s11 = sshll.u32 %s1122_s10, 4  ;;  %s924_s11 = int_to_ptr.vmem [resolvable:$true] %s923_s11 }
  0x12   :  { %210 = vmatpush.msra.mxu0 %v189_v4  ;;  %947 = vmatpush.msra.mxu2 %v189_v4  ;;  %v201_v13 = vld [vmem:[#allocation5 + $0xc8] sm:$0xff]  ;;  %v200_v15 = vld [vmem:[#allocation5 + $0xc0] sm:$0xff]  ;;  %v183_v16 = vld [vmem:[#allocation5 + $0x38] sm:$0xff] }
  0x13   :  { %419 = vmatpush.msra.mxu1 %v205_v5  ;;  %963 = vmatpush.msra.mxu3 %v205_v5  ;;  %v199_v17 = vld [vmem:[#allocation5 + $0xb8] sm:$0xff]  ;;  %v182_v18 = vld [vmem:[#allocation5 + $0x30] sm:$0xff]  ;;  %v181_v20 = vld [vmem:[#allocation5 + $0x28] sm:$0xff] }
  0x14   :  { %211 = vmatpush.msra.mxu0 %v188_v6  ;;  %948 = vmatpush.msra.mxu2 %v188_v6  ;;  %v198_v19 = vld [vmem:[#allocation5 + $0xb0] sm:$0xff]  ;;  %v197_v21 = vld [vmem:[#allocation5 + $0xa8] sm:$0xff]  ;;  %v180_v22 = vld [vmem:[#allocation5 + $0x20] sm:$0xff] }
  0x15   :  { %420 = vmatpush.msra.mxu1 %v204_v7  ;;  %964 = vmatpush.msra.mxu3 %v204_v7  ;;  %v196_v23 = vld [vmem:[#allocation5 + $0xa0] sm:$0xff]  ;;  %v179_v24 = vld [vmem:[#allocation5 + $0x18] sm:$0xff]  ;;  %v178_v26 = vld [vmem:[#allocation5 + $0x10] sm:$0xff] }
  0x16   :  { %212 = vmatpush.msra.mxu0 %v187_v8  ;;  %949 = vmatpush.msra.mxu2 %v187_v8  ;;  %v195_v25 = vld [vmem:[#allocation5 + $0x98] sm:$0xff]  ;;  %v194_v27 = vld [vmem:[#allocation5 + $0x90] sm:$0xff]  ;;  %v177_v28 = vld [vmem:[#allocation5 + $0x8] sm:$0xff] }
  0x17   :  { %421 = vmatpush.msra.mxu1 %v203_v9  ;;  %965 = vmatpush.msra.mxu3 %v203_v9  ;;  %v193_v29 = vld [vmem:[#allocation5 + $0x88] sm:$0xff]  ;;  %v176_v30 = vld [vmem:[#allocation5] sm:$0xff]  ;;  %v50_v34 = vld [vmem:[#allocation2 + $0x10] sm:$0xff] }
  0x18   :  { %213 = vmatpush.msra.mxu0 %v186_v10  ;;  %950 = vmatpush.msra.mxu2 %v186_v10  ;;  %v192_v31 = vld [vmem:[#allocation5 + $0x80] sm:$0xff]  ;;  %v49_v33 = vld [vmem:[#allocation2 + $0x8] sm:$0xff]  ;;  %v51_v35 = vld [vmem:[#allocation2 + $0x18] sm:$0xff] }
  0x19   :  { %422 = vmatpush.msra.mxu1 %v202_v11  ;;  %966 = vmatpush.msra.mxu3 %v202_v11  ;;  %v48_v32 = vld [vmem:[#allocation2] sm:$0xff]  ;;  %v53_v37 = vld [vmem:[#allocation2 + $0x28] sm:$0xff]  ;;  %v54_v38 = vld [vmem:[#allocation2 + $0x30] sm:$0xff] }
  0x1a   :  { %214 = vmatpush.msra.mxu0 %v185_v12  ;;  %951 = vmatpush.msra.mxu2 %v185_v12  ;;  %v52_v36 = vld [vmem:[#allocation2 + $0x20] sm:$0xff]  ;;  %v55_v39 = vld [vmem:[#allocation2 + $0x38] sm:$0xff]  ;;  %v113_v41 = vld [vmem:[#allocation2 + $0x208] sm:$0xff] }
  0x1b   :  { %423 = vmatpush.msra.mxu1 %v201_v13  ;;  %967 = vmatpush.msra.mxu3 %v201_v13  ;;  %v112_v40 = vld [vmem:[#allocation2 + $0x200] sm:$0xff]  ;;  %v57_v43 = vld [vmem:[#allocation2 + $0x48] sm:$0xff]  ;;  %v114_v44 = vld [vmem:[#allocation2 + $0x210] sm:$0xff] }
  0x1c   :  { %215 = vmatpush.msra.mxu0 %v184_v14  ;;  %952 = vmatpush.msra.mxu2 %v184_v14  ;;  %v56_v42 = vld [vmem:[#allocation2 + $0x40] sm:$0xff]  ;;  %v115_v45 = vld [vmem:[#allocation2 + $0x218] sm:$0xff]  ;;  %v58_v46 = vld [vmem:[#allocation2 + $0x50] sm:$0xff] }
  0x1d   :  { %424 = vmatpush.msra.mxu1 %v200_v15  ;;  %968 = vmatpush.msra.mxu3 %v200_v15  ;;  %v59_v47 = vld [vmem:[#allocation2 + $0x58] sm:$0xff]  ;;  %v116_v48 = vld [vmem:[#allocation2 + $0x220] sm:$0xff]  ;;  %v117_v49 = vld [vmem:[#allocation2 + $0x228] sm:$0xff] }
  0x1e   :  { %216 = vmatpush.msra.mxu0 %v183_v16  ;;  %953 = vmatpush.msra.mxu2 %v183_v16  ;;  %v60_v50 = vld [vmem:[#allocation2 + $0x60] sm:$0xff]  ;;  %v61_v51 = vld [vmem:[#allocation2 + $0x68] sm:$0xff]  ;;  %v118_v52 = vld [vmem:[#allocation2 + $0x230] sm:$0xff] }
  0x1f   :  { %425 = vmatpush.msra.mxu1 %v199_v17  ;;  %969 = vmatpush.msra.mxu3 %v199_v17  ;;  %v119_v53 = vld [vmem:[#allocation2 + $0x238] sm:$0xff]  ;;  %v62_v54 = vld [vmem:[#allocation2 + $0x70] sm:$0xff]  ;;  %v120_v56 = vld [vmem:[#allocation2 + $0x240] sm:$0xff] }
  0x20   :  { %217 = vmatpush.msra.mxu0 %v182_v18  ;;  %954 = vmatpush.msra.mxu2 %v182_v18  ;;  %v63_v55 = vld [vmem:[#allocation2 + $0x78] sm:$0xff]  ;;  %v121_v57 = vld [vmem:[#allocation2 + $0x248] sm:$0xff]  ;;  %v64_v58 = vld [vmem:[#allocation2 + $0x80] sm:$0xff] }
  0x21   :  { %426 = vmatpush.msra.mxu1 %v198_v19  ;;  %970 = vmatpush.msra.mxu3 %v198_v19  ;;  %v65_v59 = vld [vmem:[#allocation2 + $0x88] sm:$0xff]  ;;  %v122_v60 = vld [vmem:[#allocation2 + $0x250] sm:$0xff]  ;;  %v123_v61 = vld [vmem:[#allocation2 + $0x258] sm:$0xff] }
  0x22   :  { %218 = vmatpush.msra.mxu0 %v181_v20  ;;  %955 = vmatpush.msra.mxu2 %v181_v20  ;;  %v66_v62 = vld [vmem:[#allocation2 + $0x90] sm:$0xff]  ;;  %v67_v63 = vld [vmem:[#allocation2 + $0x98] sm:$0xff]  ;;  %v124_v0 = vld [vmem:[#allocation2 + $0x260] sm:$0xff] }
  0x23   :  { %427 = vmatpush.msra.mxu1 %v197_v21  ;;  %971 = vmatpush.msra.mxu3 %v197_v21  ;;  %v125_v1 = vld [vmem:[#allocation2 + $0x268] sm:$0xff]  ;;  %v68_v2 = vld [vmem:[#allocation2 + $0xa0] sm:$0xff]  ;;  %v126_v4 = vld [vmem:[#allocation2 + $0x270] sm:$0xff] }
  0x24   :  { %219 = vmatpush.msra.mxu0 %v180_v22  ;;  %956 = vmatpush.msra.mxu2 %v180_v22  ;;  %v69_v3 = vld [vmem:[#allocation2 + $0xa8] sm:$0xff]  ;;  %v127_v5 = vld [vmem:[#allocation2 + $0x278] sm:$0xff]  ;;  %v70_v6 = vld [vmem:[#allocation2 + $0xb0] sm:$0xff] }
  0x25   :  { %428 = vmatpush.msra.mxu1 %v196_v23  ;;  %972 = vmatpush.msra.mxu3 %v196_v23  ;;  %v71_v7 = vld [vmem:[#allocation2 + $0xb8] sm:$0xff]  ;;  %v128_v8 = vld [vmem:[#allocation2 + $0x280] sm:$0xff]  ;;  %v129_v9 = vld [vmem:[#allocation2 + $0x288] sm:$0xff] }
  0x26   :  { %220 = vmatpush.msra.mxu0 %v179_v24  ;;  %957 = vmatpush.msra.mxu2 %v179_v24  ;;  %v72_v10 = vld [vmem:[#allocation2 + $0xc0] sm:$0xff]  ;;  %v73_v11 = vld [vmem:[#allocation2 + $0xc8] sm:$0xff]  ;;  %v130_v12 = vld [vmem:[#allocation2 + $0x290] sm:$0xff] }
  0x27   :  { %429 = vmatpush.msra.mxu1 %v195_v25  ;;  %973 = vmatpush.msra.mxu3 %v195_v25  ;;  %v131_v13 = vld [vmem:[#allocation2 + $0x298] sm:$0xff]  ;;  %v74_v14 = vld [vmem:[#allocation2 + $0xd0] sm:$0xff]  ;;  %v132_v16 = vld [vmem:[#allocation2 + $0x2a0] sm:$0xff] }
  0x28   :  { %221 = vmatpush.msra.mxu0 %v178_v26  ;;  %958 = vmatpush.msra.mxu2 %v178_v26  ;;  %v75_v15 = vld [vmem:[#allocation2 + $0xd8] sm:$0xff]  ;;  %v133_v17 = vld [vmem:[#allocation2 + $0x2a8] sm:$0xff]  ;;  %v76_v18 = vld [vmem:[#allocation2 + $0xe0] sm:$0xff] }
  0x29   :  { %430 = vmatpush.msra.mxu1 %v194_v27  ;;  %974 = vmatpush.msra.mxu3 %v194_v27  ;;  %v77_v19 = vld [vmem:[#allocation2 + $0xe8] sm:$0xff]  ;;  %v134_v20 = vld [vmem:[#allocation2 + $0x2b0] sm:$0xff]  ;;  %v135_v21 = vld [vmem:[#allocation2 + $0x2b8] sm:$0xff] }
  0x2a   :  { %222 = vmatpush.msra.mxu0 %v177_v28  ;;  %959 = vmatpush.msra.mxu2 %v177_v28  ;;  %v78_v22 = vld [vmem:[#allocation2 + $0xf0] sm:$0xff]  ;;  %v79_v23 = vld [vmem:[#allocation2 + $0xf8] sm:$0xff]  ;;  %v136_v24 = vld [vmem:[#allocation2 + $0x2c0] sm:$0xff] }
  0x2b   :  { %431 = vmatpush.msra.mxu1 %v193_v29  ;;  %975 = vmatpush.msra.mxu3 %v193_v29  ;;  %v137_v25 = vld [vmem:[#allocation2 + $0x2c8] sm:$0xff]  ;;  %v80_v28 = vld [vmem:[#allocation2 + $0x100] sm:$0xff] }
  0x2c   :  { %223 = vmatpush.msra.mxu0 %v176_v30  ;;  %960 = vmatpush.msra.mxu2 %v176_v30  ;;  %v81_v29 = vld [vmem:[#allocation2 + $0x108] sm:$0xff] }
  0x2d   :  { %432 = vmatpush.msra.mxu1 %v192_v31  ;;  %224 = vmatmul.f32.vlgmr.msra.gmra.mxu0 %v48_v32  ;;  %v139_v32 = vld [vmem:[#allocation2 + $0x2d8] sm:$0xff] }
  0x2e   :  { %433 = vmatmul.f32.vlgmr.msra.gmra.mxu1 %v49_v33  ;;  %976 = vmatpush.msra.mxu3 %v192_v31  ;;  %v138_v31 = vld [vmem:[#allocation2 + $0x2d0] sm:$0xff] }
  0x2f   :  { %320 = vmatmul.f32.vlgmr.msra.gmra.mxu2 %v112_v40  ;;  %529 = vmatmul.f32.vlgmr.msra.gmra.mxu3 %v113_v41  ;;  %v140_v41 = vld [vmem:[#allocation2 + $0x2e0] sm:$0xff] }
  0x35   :  { %227 = vmatmul.f32.gmra.mxu0 %v50_v34 }
  0x36   :  { %436 = vmatmul.f32.gmra.mxu1 %v51_v35  ;;  %v82_v35 = vld [vmem:[#allocation2 + $0x110] sm:$0xff] }
  0x37   :  { %323 = vmatmul.f32.gmra.mxu2 %v114_v44  ;;  %532 = vmatmul.f32.gmra.mxu3 %v115_v45 }
  0x3d   :  { %230 = vmatmul.f32.gmra.mxu0 %v52_v36  ;;  %v83_v36 = vld [vmem:[#allocation2 + $0x118] sm:$0xff] }
  0x3e   :  { %439 = vmatmul.f32.gmra.mxu1 %v53_v37 }
  0x3f   :  { %326 = vmatmul.f32.gmra.mxu2 %v116_v48  ;;  %535 = vmatmul.f32.gmra.mxu3 %v117_v49 }
  0x45   :  { %233 = vmatmul.f32.gmra.mxu0 %v54_v38 }
  0x46   :  { %442 = vmatmul.f32.gmra.mxu1 %v55_v39 }
  0x47   :  { %329 = vmatmul.f32.gmra.mxu2 %v118_v52  ;;  %538 = vmatmul.f32.gmra.mxu3 %v119_v53  ;;  %v143_v52 = vld [vmem:[#allocation2 + $0x2f8] sm:$0xff] }
  0x4d   :  { %236 = vmatmul.f32.gmra.mxu0 %v56_v42  ;;  %v141_v42 = vld [vmem:[#allocation2 + $0x2e8] sm:$0xff] }
  0x4e   :  { %445 = vmatmul.f32.gmra.mxu1 %v57_v43 }
  0x4f   :  { %332 = vmatmul.f32.gmra.mxu2 %v120_v56  ;;  %541 = vmatmul.f32.gmra.mxu3 %v121_v57  ;;  %v86_v56 = vld [vmem:[#allocation2 + $0x130] sm:$0xff]  ;;  %v87_v57 = vld [vmem:[#allocation2 + $0x138] sm:$0xff] }
  0x55   :  { %239 = vmatmul.f32.gmra.mxu0 %v58_v46  ;;  %v84_v46 = vld [vmem:[#allocation2 + $0x120] sm:$0xff] }
  0x56   :  { %448 = vmatmul.f32.gmra.mxu1 %v59_v47  ;;  %v85_v47 = vld [vmem:[#allocation2 + $0x128] sm:$0xff] }
  0x57   :  { %335 = vmatmul.f32.gmra.mxu2 %v122_v60  ;;  %544 = vmatmul.f32.gmra.mxu3 %v123_v61  ;;  %v144_v61 = vld [vmem:[#allocation2 + $0x300] sm:$0xff] }
  0x5d   :  { %242 = vmatmul.f32.gmra.mxu0 %v60_v50 }
  0x5e   :  { %451 = vmatmul.f32.gmra.mxu1 %v61_v51  ;;  %v142_v51 = vld [vmem:[#allocation2 + $0x2f0] sm:$0xff] }
  0x5f   :  { %338 = vmatmul.f32.gmra.mxu2 %v124_v0  ;;  %547 = vmatmul.f32.gmra.mxu3 %v125_v1 }
  0x65   :  { %245 = vmatmul.f32.gmra.mxu0 %v62_v54 }
  0x66   :  { %454 = vmatmul.f32.gmra.mxu1 %v63_v55 }
  0x67   :  { %341 = vmatmul.f32.gmra.mxu2 %v126_v4  ;;  %550 = vmatmul.f32.gmra.mxu3 %v127_v5 }
  0x6d   :  { %248 = vmatmul.f32.gmra.mxu0 %v64_v58 }
  0x6e   :  { %457 = vmatmul.f32.gmra.mxu1 %v65_v59 }
  0x6f   :  { %344 = vmatmul.f32.gmra.mxu2 %v128_v8  ;;  %553 = vmatmul.f32.gmra.mxu3 %v129_v9 }
  0x75   :  { %251 = vmatmul.f32.gmra.mxu0 %v66_v62  ;;  %v145_v62 = vld [vmem:[#allocation2 + $0x308] sm:$0xff] }
  0x76   :  { %460 = vmatmul.f32.gmra.mxu1 %v67_v63 }
  0x77   :  { %347 = vmatmul.f32.gmra.mxu2 %v130_v12  ;;  %556 = vmatmul.f32.gmra.mxu3 %v131_v13 }
  0x7d   :  { %254 = vmatmul.f32.gmra.mxu0 %v68_v2  ;;  %v88_v2 = vld [vmem:[#allocation2 + $0x140] sm:$0xff] }
  0x7e   :  { %463 = vmatmul.f32.gmra.mxu1 %v69_v3  ;;  %v89_v3 = vld [vmem:[#allocation2 + $0x148] sm:$0xff] }
  0x7f   :  { %350 = vmatmul.f32.gmra.mxu2 %v132_v16  ;;  %559 = vmatmul.f32.gmra.mxu3 %v133_v17  ;;  %v91_v16 = vld [vmem:[#allocation2 + $0x158] sm:$0xff] }
  0x85   :  { %257 = vmatmul.f32.gmra.mxu0 %v70_v6 }
  0x86   :  { %466 = vmatmul.f32.gmra.mxu1 %v71_v7 }
  0x87   :  { %353 = vmatmul.f32.gmra.mxu2 %v134_v20  ;;  %562 = vmatmul.f32.gmra.mxu3 %v135_v21 }
  0x8d   :  { %260 = vmatmul.f32.gmra.mxu0 %v72_v10  ;;  %v146_v10 = vld [vmem:[#allocation2 + $0x310] sm:$0xff] }
  0x8e   :  { %469 = vmatmul.f32.gmra.mxu1 %v73_v11  ;;  %v147_v11 = vld [vmem:[#allocation2 + $0x318] sm:$0xff] }
  0x8f   :  { %356 = vmatmul.f32.gmra.mxu2 %v136_v24  ;;  %565 = vmatmul.f32.gmra.mxu3 %v137_v25  ;;  %v149_v24 = vld [vmem:[#allocation2 + $0x328] sm:$0xff] }
  0x95   :  { %263 = vmatmul.f32.gmra.mxu0 %v74_v14 }
  0x96   :  { %472 = vmatmul.f32.gmra.mxu1 %v75_v15  ;;  %v90_v15 = vld [vmem:[#allocation2 + $0x150] sm:$0xff] }
  0x97   :  { %359 = vmatmul.f32.gmra.mxu2 %v138_v31  ;;  %568 = vmatmul.f32.gmra.mxu3 %v139_v32 }
  0x9d   :  { %266 = vmatmul.f32.gmra.mxu0 %v76_v18 }
  0x9e   :  { %475 = vmatmul.f32.gmra.mxu1 %v77_v19 }
  0x9f   :  { %362 = vmatmul.f32.gmra.mxu2 %v140_v41  ;;  %571 = vmatmul.f32.gmra.mxu3 %v141_v42  ;;  %v94_v41 = vld [vmem:[#allocation2 + $0x170] sm:$0xff]  ;;  %v95_v42 = vld [vmem:[#allocation2 + $0x178] sm:$0xff] }
  0xa5   :  { %269 = vmatmul.f32.gmra.mxu0 %v78_v22 }
  0xa6   :  { %478 = vmatmul.f32.gmra.mxu1 %v79_v23  ;;  %v148_v23 = vld [vmem:[#allocation2 + $0x320] sm:$0xff] }
  0xa7   :  { %365 = vmatmul.f32.gmra.mxu2 %v142_v51  ;;  %574 = vmatmul.f32.gmra.mxu3 %v143_v52 }
  0xaa   :  { %v225_v26 = vpop.f32.mrf.mxu0 }
  0xab   :  { %v434_v27 = vpop.f32.mrf.mxu1 }
  0xac   :  { %v435_v30 = vadd.f32 %v434_v27, %v225_v26 }
  0xad   :  { %272 = vmatmul.f32.gmra.mxu0 %v80_v28  ;;  %v92_v28 = vld [vmem:[#allocation2 + $0x160] sm:$0xff] }
  0xae   :  { %626 = vst [vmem:[#allocation7] sm:$0xff] %v435_v30  ;;  %481 = vmatmul.f32.gmra.mxu1 %v81_v29  ;;  %v760_v38 = vmul.f32 %v435_v30, %v435_v30  ;;  %v93_v29 = vld [vmem:[#allocation2 + $0x168] sm:$0xff] }
  0xaf   :  { %368 = vmatmul.f32.gmra.mxu2 %v144_v61  ;;  %577 = vmatmul.f32.gmra.mxu3 %v145_v62  ;;  %v154_v62 = vld [vmem:[#allocation2 + $0x350] sm:$0xff] }
  0xb2   :  { %v228_v33 = vpop.f32.mrf.mxu0  ;;  %v321_v5 = vpop.f32.mrf.mxu2 }
  0xb3   :  { %v437_v34 = vpop.f32.mrf.mxu1  ;;  %v530_v6 = vpop.f32.mrf.mxu3 }
  0xb4   :  { %v438_v37 = vadd.f32 %v437_v34, %v228_v33  ;;  %v1157_v7 = vadd.f32 %v530_v6, %v321_v5 }
  0xb5   :  { %275 = vmatmul.f32.gmra.mxu0 %v82_v35 }
  0xb6   :  { %627 = vst [vmem:[#allocation7 + $0x8] sm:$0xff] %v438_v37  ;;  %v690_v39 = vadd.f32 %v438_v37, %v435_v30  ;;  %v761_v40 = vmul.f32 %v438_v37, %v438_v37  ;;  %484 = vmatmul.f32.gmra.mxu1 %v83_v36  ;;  %v150_v36 = vld [vmem:[#allocation2 + $0x330] sm:$0xff]  ;;  %v151_v37 = vld [vmem:[#allocation2 + $0x338] sm:$0xff] }
  0xb7   :  { %658 = vst [vmem:[#allocation7 + $0x100] sm:$0xff] %v1157_v7  ;;  %371 = vmatmul.f32.gmra.mxu2 %v146_v10  ;;  %580 = vmatmul.f32.gmra.mxu3 %v147_v11 }
  0xb8   :  { %v824_v43 = vadd.f32 %v761_v40, %v760_v38 }
  0xba   :  { %v231_v44 = vpop.f32.mrf.mxu0  ;;  %v324_v18 = vpop.f32.mrf.mxu2 }
  0xbb   :  { %v440_v45 = vpop.f32.mrf.mxu1  ;;  %v533_v19 = vpop.f32.mrf.mxu3 }
  0xbc   :  { %v441_v48 = vadd.f32 %v440_v45, %v231_v44  ;;  %v1160_v20 = vadd.f32 %v533_v19, %v324_v18  ;;  %v101_v18 = vld [vmem:[#allocation2 + $0x1a8] sm:$0xff] }
  0xbd   :  { %278 = vmatmul.f32.gmra.mxu0 %v84_v46 }
  0xbe   :  { %628 = vst [vmem:[#allocation7 + $0x10] sm:$0xff] %v441_v48  ;;  %v691_v49 = vadd.f32 %v690_v39, %v441_v48  ;;  %v762_v50 = vmul.f32 %v441_v48, %v441_v48  ;;  %487 = vmatmul.f32.gmra.mxu1 %v85_v47 }
  0xbf   :  { %659 = vst [vmem:[#allocation7 + $0x108] sm:$0xff] %v1160_v20  ;;  %374 = vmatmul.f32.gmra.mxu2 %v148_v23  ;;  %583 = vmatmul.f32.gmra.mxu3 %v149_v24 }
  0xc0   :  { %v825_v53 = vadd.f32 %v824_v43, %v762_v50  ;;  %v153_v50 = vld [vmem:[#allocation2 + $0x348] sm:$0xff] }
  0xc2   :  { %v234_v54 = vpop.f32.mrf.mxu0  ;;  %v327_v31 = vpop.f32.mrf.mxu2 }
  0xc3   :  { %v443_v55 = vpop.f32.mrf.mxu1  ;;  %v536_v32 = vpop.f32.mrf.mxu3 }
  0xc4   :  { %v444_v58 = vadd.f32 %v443_v55, %v234_v54  ;;  %v1163_v33 = vadd.f32 %v536_v32, %v327_v31  ;;  %v96_v54 = vld [vmem:[#allocation2 + $0x180] sm:$0xff]  ;;  %v97_v55 = vld [vmem:[#allocation2 + $0x188] sm:$0xff]  ;;  %v102_v31 = vld [vmem:[#allocation2 + $0x1b0] sm:$0xff] }
  0xc5   :  { %281 = vmatmul.f32.gmra.mxu0 %v86_v56  ;;  %v103_v32 = vld [vmem:[#allocation2 + $0x1b8] sm:$0xff] }
  0xc6   :  { %629 = vst [vmem:[#allocation7 + $0x18] sm:$0xff] %v444_v58  ;;  %v692_v59 = vadd.f32 %v691_v49, %v444_v58  ;;  %v763_v60 = vmul.f32 %v444_v58, %v444_v58  ;;  %490 = vmatmul.f32.gmra.mxu1 %v87_v57  ;;  %v152_v49 = vld [vmem:[#allocation2 + $0x340] sm:$0xff] }
  0xc7   :  { %660 = vst [vmem:[#allocation7 + $0x110] sm:$0xff] %v1163_v33  ;;  %377 = vmatmul.f32.gmra.mxu2 %v150_v36  ;;  %586 = vmatmul.f32.gmra.mxu3 %v151_v37 }
  0xc8   :  { %v826_v63 = vadd.f32 %v825_v53, %v763_v60 }
  0xca   :  { %v237_v0 = vpop.f32.mrf.mxu0  ;;  %v330_v44 = vpop.f32.mrf.mxu2 }
  0xcb   :  { %v446_v1 = vpop.f32.mrf.mxu1  ;;  %v539_v45 = vpop.f32.mrf.mxu3 }
  0xcc   :  { %v447_v4 = vadd.f32 %v446_v1, %v237_v0  ;;  %v1166_v46 = vadd.f32 %v539_v45, %v330_v44  ;;  %v104_v45 = vld [vmem:[#allocation2 + $0x1c0] sm:$0xff] }
  0xcd   :  { %284 = vmatmul.f32.gmra.mxu0 %v88_v2 }
  0xce   :  { %630 = vst [vmem:[#allocation7 + $0x20] sm:$0xff] %v447_v4  ;;  %v693_v8 = vadd.f32 %v692_v59, %v447_v4  ;;  %v764_v9 = vmul.f32 %v447_v4, %v447_v4  ;;  %493 = vmatmul.f32.gmra.mxu1 %v89_v3  ;;  %v98_v3 = vld [vmem:[#allocation2 + $0x190] sm:$0xff]  ;;  %v99_v4 = vld [vmem:[#allocation2 + $0x198] sm:$0xff] }
  0xcf   :  { %661 = vst [vmem:[#allocation7 + $0x118] sm:$0xff] %v1166_v46  ;;  %380 = vmatmul.f32.gmra.mxu2 %v152_v49  ;;  %589 = vmatmul.f32.gmra.mxu3 %v153_v50 }
  0xd0   :  { %v827_v12 = vadd.f32 %v826_v63, %v764_v9  ;;  %v155_v63 = vld [vmem:[#allocation2 + $0x358] sm:$0xff] }
  0xd2   :  { %v240_v13 = vpop.f32.mrf.mxu0  ;;  %v333_v57 = vpop.f32.mrf.mxu2 }
  0xd3   :  { %v449_v14 = vpop.f32.mrf.mxu1  ;;  %v542_v58 = vpop.f32.mrf.mxu3 }
  0xd4   :  { %v450_v17 = vadd.f32 %v449_v14, %v240_v13  ;;  %v1169_v59 = vadd.f32 %v542_v58, %v333_v57  ;;  %v157_v13 = vld [vmem:[#allocation2 + $0x368] sm:$0xff] }
  0xd5   :  { %287 = vmatmul.f32.gmra.mxu0 %v90_v15 }
  0xd6   :  { %631 = vst [vmem:[#allocation7 + $0x28] sm:$0xff] %v450_v17  ;;  %v694_v21 = vadd.f32 %v693_v8, %v450_v17  ;;  %v765_v22 = vmul.f32 %v450_v17, %v450_v17  ;;  %496 = vmatmul.f32.gmra.mxu1 %v91_v16  ;;  %v100_v17 = vld [vmem:[#allocation2 + $0x1a0] sm:$0xff] }
  0xd7   :  { %662 = vst [vmem:[#allocation7 + $0x120] sm:$0xff] %v1169_v59  ;;  %383 = vmatmul.f32.gmra.mxu2 %v154_v62  ;;  %592 = vmatmul.f32.gmra.mxu3 %v155_v63 }
  0xd8   :  { %v828_v25 = vadd.f32 %v827_v12, %v765_v22  ;;  %v156_v12 = vld [vmem:[#allocation2 + $0x360] sm:$0xff] }
  0xda   :  { %v243_v26 = vpop.f32.mrf.mxu0  ;;  %v336_v6 = vpop.f32.mrf.mxu2 }
  0xdb   :  { %v452_v27 = vpop.f32.mrf.mxu1  ;;  %v545_v8 = vpop.f32.mrf.mxu3 }
  0xdc   :  { %v453_v30 = vadd.f32 %v452_v27, %v243_v26  ;;  %v1172_v9 = vadd.f32 %v545_v8, %v336_v6  ;;  %v158_v26 = vld [vmem:[#allocation2 + $0x370] sm:$0xff]  ;;  %v159_v27 = vld [vmem:[#allocation2 + $0x378] sm:$0xff] }
  0xdd   :  { %290 = vmatmul.f32.gmra.mxu0 %v92_v28 }
  0xde   :  { %632 = vst [vmem:[#allocation7 + $0x30] sm:$0xff] %v453_v30  ;;  %v695_v34 = vadd.f32 %v694_v21, %v453_v30  ;;  %v766_v35 = vmul.f32 %v453_v30, %v453_v30  ;;  %499 = vmatmul.f32.gmra.mxu1 %v93_v29 }
  0xdf   :  { %663 = vst [vmem:[#allocation7 + $0x128] sm:$0xff] %v1172_v9  ;;  %386 = vmatmul.f32.gmra.mxu2 %v156_v12  ;;  %595 = vmatmul.f32.gmra.mxu3 %v157_v13  ;;  %v109_v12 = vld [vmem:[#allocation2 + $0x1e8] sm:$0xff] }
  0xe0   :  { %v829_v38 = vadd.f32 %v828_v25, %v766_v35 }
  0xe2   :  { %v246_v39 = vpop.f32.mrf.mxu0  ;;  %v339_v21 = vpop.f32.mrf.mxu2 }
  0xe3   :  { %v455_v40 = vpop.f32.mrf.mxu1  ;;  %v548_v22 = vpop.f32.mrf.mxu3 }
  0xe4   :  { %v456_v43 = vadd.f32 %v455_v40, %v246_v39  ;;  %v1175_v23 = vadd.f32 %v548_v22, %v339_v21  ;;  %v160_v40 = vld [vmem:[#allocation2 + $0x380] sm:$0xff]  ;;  %v167_v21 = vld [vmem:[#allocation2 + $0x3b8] sm:$0xff] }
  0xe5   :  { %293 = vmatmul.f32.gmra.mxu0 %v94_v41  ;;  %v161_v41 = vld [vmem:[#allocation2 + $0x388] sm:$0xff] }
  0xe6   :  { %633 = vst [vmem:[#allocation7 + $0x38] sm:$0xff] %v456_v43  ;;  %v696_v47 = vadd.f32 %v695_v34, %v456_v43  ;;  %v767_v48 = vmul.f32 %v456_v43, %v456_v43  ;;  %502 = vmatmul.f32.gmra.mxu1 %v95_v42 }
  0xe7   :  { %664 = vst [vmem:[#allocation7 + $0x130] sm:$0xff] %v1175_v23  ;;  %389 = vmatmul.f32.gmra.mxu2 %v158_v26  ;;  %598 = vmatmul.f32.gmra.mxu3 %v159_v27  ;;  %v110_v26 = vld [vmem:[#allocation2 + $0x1f0] sm:$0xff]  ;;  %v111_v27 = vld [vmem:[#allocation2 + $0x1f8] sm:$0xff] }
  0xe8   :  { %v830_v51 = vadd.f32 %v829_v38, %v767_v48 }
  0xea   :  { %v249_v52 = vpop.f32.mrf.mxu0  ;;  %v342_v35 = vpop.f32.mrf.mxu2 }
  0xeb   :  { %v458_v53 = vpop.f32.mrf.mxu1  ;;  %v551_v36 = vpop.f32.mrf.mxu3 }
  0xec   :  { %v459_v56 = vadd.f32 %v458_v53, %v249_v52  ;;  %v1178_v37 = vadd.f32 %v551_v36, %v342_v35  ;;  %v168_v35 = vld [vmem:[#allocation2 + $0x3c0] sm:$0xff]  ;;  %v169_v36 = vld [vmem:[#allocation2 + $0x3c8] sm:$0xff] }
  0xed   :  { %296 = vmatmul.f32.gmra.mxu0 %v96_v54  ;;  %v162_v54 = vld [vmem:[#allocation2 + $0x390] sm:$0xff] }
  0xee   :  { %634 = vst [vmem:[#allocation7 + $0x40] sm:$0xff] %v459_v56  ;;  %v697_v60 = vadd.f32 %v696_v47, %v459_v56  ;;  %v768_v61 = vmul.f32 %v459_v56, %v459_v56  ;;  %505 = vmatmul.f32.gmra.mxu1 %v97_v55  ;;  %v105_v47 = vld [vmem:[#allocation2 + $0x1c8] sm:$0xff]  ;;  %v163_v55 = vld [vmem:[#allocation2 + $0x398] sm:$0xff] }
  0xef   :  { %665 = vst [vmem:[#allocation7 + $0x138] sm:$0xff] %v1178_v37  ;;  %392 = vmatmul.f32.gmra.mxu2 %v160_v40  ;;  %601 = vmatmul.f32.gmra.mxu3 %v161_v41 }
  0xf0   :  { %v831_v0 = vadd.f32 %v830_v51, %v768_v61  ;;  %v107_v61 = vld [vmem:[#allocation2 + $0x1d8] sm:$0xff] }
  0xf2   :  { %v252_v1 = vpop.f32.mrf.mxu0  ;;  %v345_v49 = vpop.f32.mrf.mxu2 }
  0xf3   :  { %v461_v2 = vpop.f32.mrf.mxu1  ;;  %v554_v50 = vpop.f32.mrf.mxu3 }
  0xf4   :  { %v462_v5 = vadd.f32 %v461_v2, %v252_v1  ;;  %v1181_v51 = vadd.f32 %v554_v50, %v345_v49  ;;  %v171_v49 = vld [vmem:[#allocation2 + $0x3d8] sm:$0xff] }
  0xf5   :  { %299 = vmatmul.f32.gmra.mxu0 %v98_v3 }
  0xf6   :  { %635 = vst [vmem:[#allocation7 + $0x48] sm:$0xff] %v462_v5  ;;  %v698_v10 = vadd.f32 %v697_v60, %v462_v5  ;;  %v769_v11 = vmul.f32 %v462_v5, %v462_v5  ;;  %508 = vmatmul.f32.gmra.mxu1 %v99_v4  ;;  %v106_v60 = vld [vmem:[#allocation2 + $0x1d0] sm:$0xff]  ;;  %v164_v4 = vld [vmem:[#allocation2 + $0x3a0] sm:$0xff]  ;;  %v165_v5 = vld [vmem:[#allocation2 + $0x3a8] sm:$0xff] }
  0xf7   :  { %666 = vst [vmem:[#allocation7 + $0x140] sm:$0xff] %v1181_v51  ;;  %395 = vmatmul.f32.gmra.mxu2 %v162_v54  ;;  %604 = vmatmul.f32.gmra.mxu3 %v163_v55 }
  0xf8   :  { %v832_v14 = vadd.f32 %v831_v0, %v769_v11  ;;  %v108_v11 = vld [vmem:[#allocation2 + $0x1e0] sm:$0xff] }
  0xfa   :  { %v255_v15 = vpop.f32.mrf.mxu0  ;;  %v348_v63 = vpop.f32.mrf.mxu2 }
  0xfb   :  { %v464_v16 = vpop.f32.mrf.mxu1  ;;  %v557_v0 = vpop.f32.mrf.mxu3 }
  0xfc   :  { %v465_v19 = vadd.f32 %v464_v16, %v255_v15  ;;  %v1184_v1 = vadd.f32 %v557_v0, %v348_v63 }
  0xfd   :  { %302 = vmatmul.f32.gmra.mxu0 %v100_v17 }
  0xfe   :  { %636 = vst [vmem:[#allocation7 + $0x50] sm:$0xff] %v465_v19  ;;  %v699_v24 = vadd.f32 %v698_v10, %v465_v19  ;;  %v770_v25 = vmul.f32 %v465_v19, %v465_v19  ;;  %511 = vmatmul.f32.gmra.mxu1 %v101_v18  ;;  %v166_v19 = vld [vmem:[#allocation2 + $0x3b0] sm:$0xff] }
  0xff   :  { %667 = vst [vmem:[#allocation7 + $0x148] sm:$0xff] %v1184_v1  ;;  %398 = vmatmul.f32.gmra.mxu2 %v164_v4  ;;  %607 = vmatmul.f32.gmra.mxu3 %v165_v5 }
 0x100   :  { %v833_v28 = vadd.f32 %v832_v14, %v770_v25 }
 0x102   :  { %v258_v29 = vpop.f32.mrf.mxu0  ;;  %v351_v14 = vpop.f32.mrf.mxu2 }
 0x103   :  { %v467_v30 = vpop.f32.mrf.mxu1  ;;  %v560_v15 = vpop.f32.mrf.mxu3 }
 0x104   :  { %v468_v34 = vadd.f32 %v467_v30, %v258_v29  ;;  %v1187_v16 = vadd.f32 %v560_v15, %v351_v14 }
 0x105   :  { %305 = vmatmul.f32.gmra.mxu0 %v102_v31 }
 0x106   :  { %637 = vst [vmem:[#allocation7 + $0x58] sm:$0xff] %v468_v34  ;;  %v700_v38 = vadd.f32 %v699_v24, %v468_v34  ;;  %v771_v39 = vmul.f32 %v468_v34, %v468_v34  ;;  %514 = vmatmul.f32.gmra.mxu1 %v103_v32 }
 0x107   :  { %668 = vst [vmem:[#allocation7 + $0x150] sm:$0xff] %v1187_v16  ;;  %401 = vmatmul.f32.gmra.mxu2 %v166_v19  ;;  %610 = vmatmul.f32.gmra.mxu3 %v167_v21 }
 0x108   :  { %v834_v42 = vadd.f32 %v833_v28, %v771_v39 }
 0x10a   :  { %v261_v43 = vpop.f32.mrf.mxu0  ;;  %v354_v29 = vpop.f32.mrf.mxu2 }
 0x10b   :  { %v470_v44 = vpop.f32.mrf.mxu1  ;;  %v563_v30 = vpop.f32.mrf.mxu3 }
 0x10c   :  { %v471_v48 = vadd.f32 %v470_v44, %v261_v43  ;;  %v1190_v31 = vadd.f32 %v563_v30, %v354_v29 }
 0x10d   :  { %308 = vmatmul.f32.gmra.mxu0 %v104_v45 }
 0x10e   :  { %638 = vst [vmem:[#allocation7 + $0x60] sm:$0xff] %v471_v48  ;;  %v701_v52 = vadd.f32 %v700_v38, %v471_v48  ;;  %v772_v53 = vmul.f32 %v471_v48, %v471_v48  ;;  %517 = vmatmul.f32.gmra.mxu1 %v105_v47  ;;  %v170_v48 = vld [vmem:[#allocation2 + $0x3d0] sm:$0xff] }
 0x10f   :  { %669 = vst [vmem:[#allocation7 + $0x158] sm:$0xff] %v1190_v31  ;;  %404 = vmatmul.f32.gmra.mxu2 %v168_v35  ;;  %613 = vmatmul.f32.gmra.mxu3 %v169_v36 }
 0x110   :  { %v835_v56 = vadd.f32 %v834_v42, %v772_v53 }
 0x112   :  { %v264_v57 = vpop.f32.mrf.mxu0  ;;  %v357_v42 = vpop.f32.mrf.mxu2 }
 0x113   :  { %v473_v58 = vpop.f32.mrf.mxu1  ;;  %v566_v43 = vpop.f32.mrf.mxu3 }
 0x114   :  { %v474_v62 = vadd.f32 %v473_v58, %v264_v57  ;;  %v1193_v44 = vadd.f32 %v566_v43, %v357_v42 }
 0x115   :  { %311 = vmatmul.f32.gmra.mxu0 %v106_v60 }
 0x116   :  { %639 = vst [vmem:[#allocation7 + $0x68] sm:$0xff] %v474_v62  ;;  %v702_v2 = vadd.f32 %v701_v52, %v474_v62  ;;  %v773_v3 = vmul.f32 %v474_v62, %v474_v62  ;;  %520 = vmatmul.f32.gmra.mxu1 %v107_v61  ;;  %v172_v61 = vld [vmem:[#allocation2 + $0x3e0] sm:$0xff]  ;;  %v173_v62 = vld [vmem:[#allocation2 + $0x3e8] sm:$0xff] }
 0x117   :  { %670 = vst [vmem:[#allocation7 + $0x160] sm:$0xff] %v1193_v44  ;;  %407 = vmatmul.f32.gmra.mxu2 %v170_v48  ;;  %616 = vmatmul.f32.gmra.mxu3 %v171_v49 }
 0x118   :  { %v836_v6 = vadd.f32 %v835_v56, %v773_v3 }
 0x11a   :  { %v267_v8 = vpop.f32.mrf.mxu0  ;;  %v360_v55 = vpop.f32.mrf.mxu2 }
 0x11b   :  { %v476_v10 = vpop.f32.mrf.mxu1  ;;  %v569_v56 = vpop.f32.mrf.mxu3 }
 0x11c   :  { %v477_v13 = vadd.f32 %v476_v10, %v267_v8  ;;  %v1196_v57 = vadd.f32 %v569_v56, %v360_v55 }
 0x11d   :  { %314 = vmatmul.f32.gmra.mxu0 %v108_v11  ;;  %v174_v11 = vld [vmem:[#allocation2 + $0x3f0] sm:$0xff] }
 0x11e   :  { %640 = vst [vmem:[#allocation7 + $0x70] sm:$0xff] %v477_v13  ;;  %v703_v17 = vadd.f32 %v702_v2, %v477_v13  ;;  %v774_v18 = vmul.f32 %v477_v13, %v477_v13  ;;  %523 = vmatmul.f32.gmra.mxu1 %v109_v12  ;;  %v175_v12 = vld [vmem:[#allocation2 + $0x3f8] sm:$0xff] }
 0x11f   :  { %671 = vst [vmem:[#allocation7 + $0x168] sm:$0xff] %v1196_v57  ;;  %410 = vmatmul.f32.gmra.mxu2 %v172_v61  ;;  %619 = vmatmul.f32.gmra.mxu3 %v173_v62 }
 0x120   :  { %v837_v22 = vadd.f32 %v836_v6, %v774_v18 }
 0x122   :  { %v270_v24 = vpop.f32.mrf.mxu0  ;;  %v363_v4 = vpop.f32.mrf.mxu2 }
 0x123   :  { %v479_v25 = vpop.f32.mrf.mxu1  ;;  %v572_v5 = vpop.f32.mrf.mxu3 }
 0x124   :  { %v480_v28 = vadd.f32 %v479_v25, %v270_v24  ;;  %v1199_v6 = vadd.f32 %v572_v5, %v363_v4 }
 0x125   :  { %317 = vmatmul.f32.gmra.mxu0 %v110_v26 }
 0x126   :  { %641 = vst [vmem:[#allocation7 + $0x78] sm:$0xff] %v480_v28  ;;  %v704_v32 = vadd.f32 %v703_v17, %v480_v28  ;;  %v775_v34 = vmul.f32 %v480_v28, %v480_v28  ;;  %526 = vmatmul.f32.gmra.mxu1 %v111_v27 }
 0x127   :  { %672 = vst [vmem:[#allocation7 + $0x170] sm:$0xff] %v1199_v6  ;;  %413 = vmatmul.f32.gmra.mxu2 %v174_v11  ;;  %622 = vmatmul.f32.gmra.mxu3 %v175_v12 }
 0x128   :  { %v838_v38 = vadd.f32 %v837_v22, %v775_v34 }
 0x12a   :  { %v273_v39 = vpop.f32.mrf.mxu0  ;;  %v366_v18 = vpop.f32.mrf.mxu2 }
 0x12b   :  { %v482_v40 = vpop.f32.mrf.mxu1  ;;  %v575_v19 = vpop.f32.mrf.mxu3 }
 0x12c   :  { %v483_v41 = vadd.f32 %v482_v40, %v273_v39  ;;  %v1202_v21 = vadd.f32 %v575_v19, %v366_v18 }
 0x12e   :  { %642 = vst [vmem:[#allocation7 + $0x80] sm:$0xff] %v483_v41  ;;  %v705_v45 = vadd.f32 %v704_v32, %v483_v41  ;;  %v776_v47 = vmul.f32 %v483_v41, %v483_v41 }
 0x12f   :  { %673 = vst [vmem:[#allocation7 + $0x178] sm:$0xff] %v1202_v21 }
 0x130   :  { %v839_v50 = vadd.f32 %v838_v38, %v776_v47 }
 0x132   :  { %v276_v52 = vpop.f32.mrf.mxu0  ;;  %v369_v29 = vpop.f32.mrf.mxu2 }
 0x133   :  { %v485_v53 = vpop.f32.mrf.mxu1  ;;  %v578_v30 = vpop.f32.mrf.mxu3 }
 0x134   :  { %v486_v54 = vadd.f32 %v485_v53, %v276_v52  ;;  %v1205_v32 = vadd.f32 %v578_v30, %v369_v29 }
 0x136   :  { %643 = vst [vmem:[#allocation7 + $0x88] sm:$0xff] %v486_v54  ;;  %v706_v58 = vadd.f32 %v705_v45, %v486_v54  ;;  %v777_v60 = vmul.f32 %v486_v54, %v486_v54 }
 0x137   :  { %674 = vst [vmem:[#allocation7 + $0x180] sm:$0xff] %v1205_v32 }
 0x138   :  { %v840_v63 = vadd.f32 %v839_v50, %v777_v60 }
 0x13a   :  { %v279_v0 = vpop.f32.mrf.mxu0  ;;  %v372_v41 = vpop.f32.mrf.mxu2 }
 0x13b   :  { %v488_v2 = vpop.f32.mrf.mxu1  ;;  %v581_v42 = vpop.f32.mrf.mxu3 }
 0x13c   :  { %v489_v3 = vadd.f32 %v488_v2, %v279_v0  ;;  %v1214_v43 = vadd.f32 %v581_v42, %v372_v41 }
 0x13e   :  { %644 = vst [vmem:[#allocation7 + $0x90] sm:$0xff] %v489_v3  ;;  %v707_v8 = vadd.f32 %v706_v58, %v489_v3  ;;  %v778_v10 = vmul.f32 %v489_v3, %v489_v3 }
 0x13f   :  { %675 = vst [vmem:[#allocation7 + $0x188] sm:$0xff] %v1214_v43 }
 0x140   :  { %v841_v13 = vadd.f32 %v840_v63, %v778_v10 }
 0x142   :  { %v282_v14 = vpop.f32.mrf.mxu0  ;;  %v375_v49 = vpop.f32.mrf.mxu2 }
 0x143   :  { %v491_v15 = vpop.f32.mrf.mxu1  ;;  %v584_v50 = vpop.f32.mrf.mxu3 }
 0x144   :  { %v492_v17 = vadd.f32 %v491_v15, %v282_v14  ;;  %v1218_v52 = vadd.f32 %v584_v50, %v375_v49 }
 0x146   :  { %645 = vst [vmem:[#allocation7 + $0x98] sm:$0xff] %v492_v17  ;;  %v708_v22 = vadd.f32 %v707_v8, %v492_v17  ;;  %v779_v24 = vmul.f32 %v492_v17, %v492_v17 }
 0x147   :  { %676 = vst [vmem:[#allocation7 + $0x190] sm:$0xff] %v1218_v52 }
 0x148   :  { %v842_v25 = vadd.f32 %v841_v13, %v779_v24 }
 0x14a   :  { %v285_v26 = vpop.f32.mrf.mxu0  ;;  %v378_v56 = vpop.f32.mrf.mxu2 }
 0x14b   :  { %v494_v27 = vpop.f32.mrf.mxu1  ;;  %v587_v58 = vpop.f32.mrf.mxu3 }
 0x14c   :  { %v495_v28 = vadd.f32 %v494_v27, %v285_v26  ;;  %v1221_v60 = vadd.f32 %v587_v58, %v378_v56 }
 0x14e   :  { %646 = vst [vmem:[#allocation7 + $0xa0] sm:$0xff] %v495_v28  ;;  %v1207_v34 = vadd.f32 %v708_v22, %v495_v28  ;;  %v780_v35 = vmul.f32 %v495_v28, %v495_v28 }
 0x14f   :  { %677 = vst [vmem:[#allocation7 + $0x198] sm:$0xff] %v1221_v60 }
 0x150   :  { %v1210_v36 = vadd.f32 %v842_v25, %v780_v35 }
 0x152   :  { %v288_v38 = vpop.f32.mrf.mxu0  ;;  %v381_v0 = vpop.f32.mrf.mxu2 }
 0x153   :  { %v497_v39 = vpop.f32.mrf.mxu1  ;;  %v590_v2 = vpop.f32.mrf.mxu3 }
 0x154   :  { %v1212_v40 = vadd.f32 %v497_v39, %v288_v38  ;;  %v1224_v3 = vadd.f32 %v590_v2, %v381_v0 }
 0x156   :  { %647 = vst [vmem:[#allocation7 + $0xa8] sm:$0xff] %v1212_v40  ;;  %v781_v42 = vmul.f32 %v1212_v40, %v1212_v40 }
 0x157   :  { %678 = vst [vmem:[#allocation7 + $0x1a0] sm:$0xff] %v1224_v3 }
 0x15a   :  { %v291_v45 = vpop.f32.mrf.mxu0  ;;  %v384_v10 = vpop.f32.mrf.mxu2 }
 0x15b   :  { %v500_v47 = vpop.f32.mrf.mxu1  ;;  %v593_v11 = vpop.f32.mrf.mxu3 }
 0x15c   :  { %v501_v48 = vadd.f32 %v500_v47, %v291_v45  ;;  %v1227_v12 = vadd.f32 %v593_v11, %v384_v10  ;;  %v710_v45 = vadd.f32 %v1207_v34, %v1212_v40 }
 0x15e   :  { %648 = vst [vmem:[#allocation7 + $0xb0] sm:$0xff] %v501_v48  ;;  %v782_v47 = vmul.f32 %v501_v48, %v501_v48 }
 0x15f   :  { %679 = vst [vmem:[#allocation7 + $0x1a8] sm:$0xff] %v1227_v12 }
 0x162   :  { %v294_v53 = vpop.f32.mrf.mxu0  ;;  %v387_v17 = vpop.f32.mrf.mxu2 }
 0x163   :  { %v503_v54 = vpop.f32.mrf.mxu1  ;;  %v596_v18 = vpop.f32.mrf.mxu3 }
 0x164   :  { %v504_v55 = vadd.f32 %v503_v54, %v294_v53  ;;  %v1230_v19 = vadd.f32 %v596_v18, %v387_v17  ;;  %v844_v53 = vadd.f32 %v1210_v36, %v781_v42  ;;  %v711_v54 = vadd.f32 %v710_v45, %v501_v48 }
 0x166   :  { %649 = vst [vmem:[#allocation7 + $0xb8] sm:$0xff] %v504_v55  ;;  %v783_v56 = vmul.f32 %v504_v55, %v504_v55  ;;  %v845_v2 = vadd.f32 %v844_v53, %v782_v47 }
 0x167   :  { %680 = vst [vmem:[#allocation7 + $0x1b0] sm:$0xff] %v1230_v19 }
 0x168   :  { %v846_v10 = vadd.f32 %v845_v2, %v783_v56 }
 0x16a   :  { %v297_v61 = vpop.f32.mrf.mxu0  ;;  %v390_v26 = vpop.f32.mrf.mxu2 }
 0x16b   :  { %v506_v62 = vpop.f32.mrf.mxu1  ;;  %v599_v27 = vpop.f32.mrf.mxu3 }
 0x16c   :  { %v507_v63 = vadd.f32 %v506_v62, %v297_v61  ;;  %v1233_v28 = vadd.f32 %v599_v27, %v390_v26 }
 0x16e   :  { %650 = vst [vmem:[#allocation7 + $0xc0] sm:$0xff] %v507_v63 }
 0x16f   :  { %681 = vst [vmem:[#allocation7 + $0x1b8] sm:$0xff] %v1233_v28 }
 0x172   :  { %v300_v4 = vpop.f32.mrf.mxu0  ;;  %v393_v38 = vpop.f32.mrf.mxu2 }
 0x173   :  { %v509_v5 = vpop.f32.mrf.mxu1  ;;  %v602_v39 = vpop.f32.mrf.mxu3 }
 0x174   :  { %v510_v8 = vadd.f32 %v509_v5, %v300_v4  ;;  %v1236_v41 = vadd.f32 %v602_v39, %v393_v38  ;;  %v712_v4 = vadd.f32 %v711_v54, %v504_v55  ;;  %v784_v5 = vmul.f32 %v507_v63, %v507_v63 }
 0x176   :  { %651 = vst [vmem:[#allocation7 + $0xc8] sm:$0xff] %v510_v8  ;;  %v713_v34 = vadd.f32 %v712_v4, %v507_v63  ;;  %v785_v40 = vmul.f32 %v510_v8, %v510_v8  ;;  %v847_v11 = vadd.f32 %v846_v10, %v784_v5  ;;  %v793_v10 = vmul.f32 %v1160_v20, %v1160_v20 }
 0x177   :  { %682 = vst [vmem:[#allocation7 + $0x1c0] sm:$0xff] %v1236_v41 }
 0x178   :  { %v848_v17 = vadd.f32 %v847_v11, %v785_v40  ;;  %v794_v11 = vmul.f32 %v1163_v33, %v1163_v33 }
 0x17a   :  { %v303_v13 = vpop.f32.mrf.mxu0  ;;  %v396_v61 = vpop.f32.mrf.mxu2 }
 0x17b   :  { %v512_v14 = vpop.f32.mrf.mxu1  ;;  %v605_v62 = vpop.f32.mrf.mxu3 }
 0x17c   :  { %v513_v15 = vadd.f32 %v512_v14, %v303_v13  ;;  %v1244_v0 = vadd.f32 %v605_v62, %v396_v61  ;;  %v714_v13 = vadd.f32 %v713_v34, %v510_v8 }
 0x17e   :  { %652 = vst [vmem:[#allocation7 + $0xd0] sm:$0xff] %v513_v15  ;;  %v786_v14 = vmul.f32 %v513_v15, %v513_v15  ;;  %v715_v18 = vadd.f32 %v714_v13, %v513_v15 }
 0x17f   :  { %683 = vst [vmem:[#allocation7 + $0x1c8] sm:$0xff] %v1244_v0 }
 0x180   :  { %v849_v55 = vadd.f32 %v848_v17, %v786_v14 }
 0x182   :  { %v306_v22 = vpop.f32.mrf.mxu0  ;;  %v399_v26 = vpop.f32.mrf.mxu2 }
 0x183   :  { %v515_v24 = vpop.f32.mrf.mxu1  ;;  %v608_v27 = vpop.f32.mrf.mxu3 }
 0x184   :  { %v516_v25 = vadd.f32 %v515_v24, %v306_v22 }
 0x186   :  { %653 = vst [vmem:[#allocation7 + $0xd8] sm:$0xff] %v516_v25  ;;  %v787_v22 = vmul.f32 %v516_v25, %v516_v25 }
 0x188   :  { %v850_v63 = vadd.f32 %v849_v55, %v787_v22 }
 0x18a   :  { %v309_v29 = vpop.f32.mrf.mxu0  ;;  %v402_v56 = vpop.f32.mrf.mxu2 }
 0x18b   :  { %v518_v30 = vpop.f32.mrf.mxu1  ;;  %v611_v61 = vpop.f32.mrf.mxu3 }
 0x18c   :  { %v519_v35 = vadd.f32 %v518_v30, %v309_v29  ;;  %v1247_v29 = vadd.f32 %v608_v27, %v399_v26  ;;  %v716_v30 = vadd.f32 %v715_v18, %v516_v25  ;;  %v1250_v62 = vadd.f32 %v611_v61, %v402_v56 }
 0x18e   :  { %654 = vst [vmem:[#allocation7 + $0xe0] sm:$0xff] %v519_v35  ;;  %v788_v38 = vmul.f32 %v519_v35, %v519_v35  ;;  %v717_v39 = vadd.f32 %v716_v30, %v519_v35  ;;  %v792_v35 = vmul.f32 %v1157_v7, %v1157_v7  ;;  %v798_v30 = vmul.f32 %v1175_v23, %v1175_v23 }
 0x18f   :  { %684 = vst [vmem:[#allocation7 + $0x1d0] sm:$0xff] %v1247_v29 }
 0x190   :  { %v851_v42 = vadd.f32 %v850_v63, %v788_v38  ;;  %685 = vst [vmem:[#allocation7 + $0x1d8] sm:$0xff] %v1250_v62 }
 0x192   :  { %v312_v49 = vpop.f32.mrf.mxu0 }
 0x193   :  { %v521_v50 = vpop.f32.mrf.mxu1 }
 0x194   :  { %v522_v58 = vadd.f32 %v521_v50, %v312_v49 }
 0x196   :  { %655 = vst [vmem:[#allocation7 + $0xe8] sm:$0xff] %v522_v58  ;;  %v789_v8 = vmul.f32 %v522_v58, %v522_v58  ;;  %v718_v45 = vadd.f32 %v717_v39, %v522_v58 }
 0x198   :  { %v852_v50 = vadd.f32 %v851_v42, %v789_v8 }
 0x19a   :  { %v315_v36 = vpop.f32.mrf.mxu0 }
 0x19b   :  { %v524_v48 = vpop.f32.mrf.mxu1 }
 0x19c   :  { %v525_v24 = vadd.f32 %v524_v48, %v315_v36  ;;  %v405_v36 = vpop.f32.mrf.mxu2  ;;  %v614_v48 = vpop.f32.mrf.mxu3 }
 0x19d   :  { %v1262_v17 = vadd.f32 %v614_v48, %v405_v36  ;;  %v808_v48 = vmul.f32 %v1205_v32, %v1205_v32 }
 0x19e   :  { %656 = vst [vmem:[#allocation7 + $0xf0] sm:$0xff] %v525_v24  ;;  %v790_v47 = vmul.f32 %v525_v24, %v525_v24  ;;  %v719_v53 = vadd.f32 %v718_v45, %v525_v24 }
 0x19f   :  { %686 = vst [vmem:[#allocation7 + $0x1e0] sm:$0xff] %v1262_v17 }
 0x1a0   :  { %v853_v25 = vadd.f32 %v852_v50, %v790_v47 }
 0x1a2   :  { %v318_v49 = vpop.f32.mrf.mxu0 }
 0x1a3   :  { %v527_v15 = vpop.f32.mrf.mxu1 }
 0x1a4   :  { %v528_v54 = vadd.f32 %v527_v15, %v318_v49  ;;  %v408_v63 = vpop.f32.mrf.mxu2  ;;  %v617_v39 = vpop.f32.mrf.mxu3 }
 0x1a5   :  { %v1277_v8 = vadd.f32 %v617_v39, %v408_v63 }
 0x1a6   :  { %657 = vst [vmem:[#allocation7 + $0xf8] sm:$0xff] %v528_v54  ;;  %v720_v2 = vadd.f32 %v719_v53, %v528_v54  ;;  %v791_v4 = vmul.f32 %v528_v54, %v528_v54  ;;  %v802_v53 = vmul.f32 %v1187_v16, %v1187_v16 }
 0x1a7   :  { %687 = vst [vmem:[#allocation7 + $0x1e8] sm:$0xff] %v1277_v8 }
 0x1a8   :  { %v721_v58 = vadd.f32 %v720_v2, %v1157_v7  ;;  %v854_v5 = vadd.f32 %v853_v25, %v791_v4  ;;  %v795_v7 = vmul.f32 %v1166_v46, %v1166_v46 }
 0x1aa   :  { %v722_v34 = vadd.f32 %v721_v58, %v1160_v20  ;;  %v855_v40 = vadd.f32 %v854_v5, %v792_v35  ;;  %v796_v20 = vmul.f32 %v1169_v59, %v1169_v59 }
 0x1ac   :  { %v723_v13 = vadd.f32 %v722_v34, %v1163_v33  ;;  %v856_v14 = vadd.f32 %v855_v40, %v793_v10  ;;  %v797_v33 = vmul.f32 %v1172_v9, %v1172_v9  ;;  %v411_v56 = vpop.f32.mrf.mxu2  ;;  %v620_v61 = vpop.f32.mrf.mxu3 }
 0x1ad   :  { %v1292_v25 = vadd.f32 %v620_v61, %v411_v56  ;;  %v820_v56 = vmul.f32 %v1262_v17, %v1262_v17 }
 0x1ae   :  { %v724_v18 = vadd.f32 %v723_v13, %v1166_v46  ;;  %v857_v22 = vadd.f32 %v856_v14, %v794_v11 }
 0x1af   :  { %688 = vst [vmem:[#allocation7 + $0x1f0] sm:$0xff] %v1292_v25 }
 0x1b0   :  { %v725_v24 = vadd.f32 %v724_v18, %v1169_v59  ;;  %v858_v26 = vadd.f32 %v857_v22, %v795_v7  ;;  %v799_v59 = vmul.f32 %v1178_v37, %v1178_v37 }
 0x1b2   :  { %v726_v27 = vadd.f32 %v725_v24, %v1172_v9  ;;  %v859_v55 = vadd.f32 %v858_v26, %v796_v20  ;;  %v800_v9 = vmul.f32 %v1181_v51, %v1181_v51 }
 0x1b4   :  { %v727_v46 = vadd.f32 %v726_v27, %v1175_v23  ;;  %v860_v38 = vadd.f32 %v859_v55, %v797_v33  ;;  %v801_v23 = vmul.f32 %v1184_v1, %v1184_v1  ;;  %v623_v11 = vpop.f32.mrf.mxu3  ;;  %v812_v55 = vmul.f32 %v1224_v3, %v1224_v3 }
 0x1b6   :  { %v728_v42 = vadd.f32 %v727_v46, %v1178_v37  ;;  %v861_v45 = vadd.f32 %v860_v38, %v798_v30 }
 0x1b8   :  { %v729_v47 = vadd.f32 %v728_v42, %v1181_v51  ;;  %v862_v49 = vadd.f32 %v861_v45, %v799_v59  ;;  %v803_v51 = vmul.f32 %v1190_v31, %v1190_v31  ;;  %v815_v42 = vmul.f32 %v1233_v28, %v1233_v28 }
 0x1ba   :  { %v730_v15 = vadd.f32 %v729_v47, %v1184_v1  ;;  %v863_v50 = vadd.f32 %v862_v49, %v800_v9  ;;  %v804_v1 = vmul.f32 %v1193_v44, %v1193_v44  ;;  %v816_v47 = vmul.f32 %v1236_v41, %v1236_v41 }
 0x1bc   :  { %v731_v37 = vadd.f32 %v730_v15, %v1187_v16  ;;  %v864_v54 = vadd.f32 %v863_v50, %v801_v23  ;;  %v805_v16 = vmul.f32 %v1196_v57, %v1196_v57  ;;  %v817_v23 = vmul.f32 %v1244_v0, %v1244_v0 }
 0x1bd   :  { %v818_v50 = vmul.f32 %v1247_v29, %v1247_v29 }
 0x1be   :  { %v865_v2 = vadd.f32 %v864_v54, %v802_v53  ;;  %v732_v4 = vadd.f32 %v731_v37, %v1190_v31  ;;  %v806_v31 = vmul.f32 %v1199_v6, %v1199_v6  ;;  %v819_v37 = vmul.f32 %v1250_v62, %v1250_v62 }
 0x1c0   :  { %v733_v35 = vadd.f32 %v732_v4, %v1193_v44  ;;  %v866_v58 = vadd.f32 %v865_v2, %v803_v51  ;;  %v414_v44 = vpop.f32.mrf.mxu2  ;;  %v821_v51 = vmul.f32 %v1277_v8, %v1277_v8  ;;  %v822_v4 = vmul.f32 %v1292_v25, %v1292_v25 }
 0x1c1   :  { %v624_v13 = vadd.f32 %v623_v11, %v414_v44 }
 0x1c2   :  { %v734_v5 = vadd.f32 %v733_v35, %v1196_v57  ;;  %v867_v10 = vadd.f32 %v866_v58, %v804_v1  ;;  %v807_v57 = vmul.f32 %v1202_v21, %v1202_v21 }
 0x1c3   :  { %689 = vst [vmem:[#allocation7 + $0x1f8] sm:$0xff] %v624_v13  ;;  %v823_v1 = vmul.f32 %v624_v13, %v624_v13 }
 0x1c4   :  { %v735_v34 = vadd.f32 %v734_v5, %v1199_v6  ;;  %v868_v40 = vadd.f32 %v867_v10, %v805_v16  ;;  %906 = dma.vmem_to_hbm [thread:$0]  %s899_s1, 8192, %s901_s5, [#allocation4], %s1118_s27, %s1118_s27, %s1119_s28   ;;  %v809_v6 = vmul.f32 %v1214_v43, %v1214_v43 }
 0x1c6   :  { %v736_v14 = vadd.f32 %v735_v34, %v1202_v21  ;;  %v869_v36 = vadd.f32 %v868_v40, %v806_v31  ;;  %v810_v21 = vmul.f32 %v1218_v52, %v1218_v52 }
 0x1c8   :  { %v737_v7 = vadd.f32 %v736_v14, %v1205_v32  ;;  %v870_v18 = vadd.f32 %v869_v36, %v807_v57  ;;  %v811_v32 = vmul.f32 %v1221_v60, %v1221_v60 }
 0x1ca   :  { %v738_v22 = vadd.f32 %v737_v7, %v1214_v43  ;;  %v871_v20 = vadd.f32 %v870_v18, %v808_v48  ;;  %v813_v43 = vmul.f32 %v1227_v12, %v1227_v12 }
 0x1cc   :  { %v739_v24 = vadd.f32 %v738_v22, %v1218_v52  ;;  %v872_v26 = vadd.f32 %v871_v20, %v809_v6  ;;  %v814_v52 = vmul.f32 %v1230_v19, %v1230_v19 }
 0x1ce   :  { %v740_v33 = vadd.f32 %v739_v24, %v1221_v60  ;;  %v873_v27 = vadd.f32 %v872_v26, %v810_v21 }
 0x1d0   :  { %v741_v30 = vadd.f32 %v740_v33, %v1224_v3  ;;  %v874_v46 = vadd.f32 %v873_v27, %v811_v32 }
 0x1d2   :  { %v742_v38 = vadd.f32 %v741_v30, %v1227_v12  ;;  %v875_v63 = vadd.f32 %v874_v46, %v812_v55 }
 0x1d4   :  { %v743_v39 = vadd.f32 %v742_v38, %v1230_v19  ;;  %v876_v59 = vadd.f32 %v875_v63, %v813_v43 }
 0x1d6   :  { %v744_v60 = vadd.f32 %v743_v39, %v1233_v28  ;;  %v877_v45 = vadd.f32 %v876_v59, %v814_v52 }
 0x1d8   :  { %v878_v3 = vadd.f32 %v877_v45, %v815_v42  ;;  %v745_v9 = vadd.f32 %v744_v60, %v1236_v41 }
 0x1da   :  { %v879_v12 = vadd.f32 %v878_v3, %v816_v47  ;;  %v746_v49 = vadd.f32 %v745_v9, %v1244_v0 }
 0x1dc   :  { %v880_v19 = vadd.f32 %v879_v12, %v817_v23  ;;  %v747_v15 = vadd.f32 %v746_v49, %v1247_v29 }
 0x1de   :  { %v881_v28 = vadd.f32 %v880_v19, %v818_v50  ;;  %v748_v53 = vadd.f32 %v747_v15, %v1250_v62 }
 0x1e0   :  { %v882_v54 = vadd.f32 %v881_v28, %v819_v37  ;;  %v749_v41 = vadd.f32 %v748_v53, %v1262_v17 }
 0x1e2   :  { %v883_v61 = vadd.f32 %v882_v54, %v820_v56  ;;  %v750_v0 = vadd.f32 %v749_v41, %v1277_v8 }
 0x1e4   :  { %v884_v2 = vadd.f32 %v883_v61, %v821_v51  ;;  %v751_v29 = vadd.f32 %v750_v0, %v1292_v25 }
 0x1e6   :  { %v885_v62 = vadd.f32 %v884_v2, %v822_v4  ;;  %v752_v35 = vadd.f32 %v751_v29, %v624_v13 }
 0x1e8   :  { %v753_v58 = vrot.slane %v752_v35, 4  ;;  %v886_v16 = vadd.f32 %v885_v62, %v823_v1 }
 0x1ea   :  { %v754_v5 = vadd.f32 %v753_v58, %v752_v35  ;;  %v887_v10 = vrot.slane %v886_v16, 4 }
 0x1ec   :  { %v755_v17 = vrot.slane %v754_v5, 2  ;;  %v888_v31 = vadd.f32 %v887_v10, %v886_v16 }
 0x1ee   :  { %v889_v34 = vrot.slane %v888_v31, 2  ;;  %v756_v40 = vadd.f32 %v755_v17, %v754_v5 }
 0x1f0   :  { %v757_v8 = vrot.slane %v756_v40, 1  ;;  %v890_v44 = vadd.f32 %v889_v34, %v888_v31 }
 0x1f2   :  { %v758_v25 = vadd.f32 %v757_v8, %v756_v40  ;;  %v891_v11 = vrot.slane %v890_v44, 1 }
 0x1f4   :  { %759 = vst [vmem:[#allocation8] sm:$0x1] %v758_v25  ;;  %v892_v13 = vadd.f32 %v891_v11, %v890_v44 }
 0x1f5   :  { %917 = dma.vmem_to_hbm [thread:$0]  %s913_s6, 16, %s915_s9, [#allocation9]  }
 0x1f6   :  { %893 = vst [vmem:[#allocation10] sm:$0x1] %v892_v13 }
 0x1f7   :  { %928 = dma.vmem_to_hbm [thread:$0]  %s924_s11, 16, %s926_s14, [#allocation9]  }
 0x1f8   :  { %1110 = dma.done.wait [#allocation4], 8192  }
 0x1f9   :  { %1111 = vsyncadd [#allocation4], 4294959104 }
 0x1fa   :  { %1112 = dma.done.wait [#allocation9], 32  }
 0x1fb   :  { %1113 = vsyncadd [#allocation9], 4294967264 }
 0x1fc   :  { %941 = vsyncpa [#allocation3], 1 }
 0x1fd   :  { %942 = vsyncpa [#allocation6], 1 }
 0x1fe   :  { %943 = vsyncpa [#allocation4], 1 }
 0x1ff   :  { %944 = vsyncpa [#allocation9], 1 }

</bundles_post_ra>
